<compile_context>
chip_gen: v5e
topology: v5e:2x2
jax: 0.10.0
libtpu: 0.0.40
codegen_flags: <defaults>
</compile_context>

<pallas_src>
import jax
import jax.numpy as jnp
from jax.experimental import pallas as pl
from jax.experimental.pallas import tpu as pltpu

_LANES = 128


def _round_up(x, m):
    return ((x + m - 1) // m) * m


def _decoder_kernel(x_ref, w1_ref, b1_ref, w2_ref, b2_ref, o_ref):
    # x_ref: (TB, D) compute dtype; w1: (D, D); b1: (1, D) f32;
    # w2: (D, O_pad); b2: (1, O_pad) f32; o: (TB, O_pad)
    x = x_ref[...]
    # fc1 on the MXU, f32 accumulation.
    h = jnp.dot(x, w1_ref[...], preferred_element_type=jnp.float32)   # (TB, D) f32
    # Bias + ReLU in f32 on the VPU (no bf16 elementwise: v5e-safe).
    h = jnp.maximum(h + b1_ref[...], 0.0)
    # Feed fc2 in the MXU compute dtype, accumulate f32.
    h = h.astype(w2_ref.dtype)
    o = jnp.dot(h, w2_ref[...], preferred_element_type=jnp.float32)   # (TB, O_pad) f32
    o_ref[...] = (o + b2_ref[...]).astype(o_ref.dtype)


def agent_embedding_decoder(agent_embedding, w1, b1, w2, b2,
                            *, block_rows=1024, compute_dtype=jnp.bfloat16):
    """Forward pass of Agent_Embedding_Decoder.

    agent_embedding: (B, D) f32
    w1: (D, D)   b1: (D,)      -- fc1, stored as (in, out)
    w2: (D, O)   b2: (O,)      -- fc2, stored as (in, out), O = obs_dim + N
    Returns (B, O) in agent_embedding.dtype.
    """
    B, D = agent_embedding.shape
    O = w2.shape[1]
    out_dtype = agent_embedding.dtype

    # Lane-dense output: pad O up to a multiple of 128 (unmasked vst).
    O_pad = _round_up(max(O, _LANES), _LANES)

    # Batch tiling: big tiles amortize per-step overhead; weights stay resident.
    TB = min(block_rows, _round_up(B, 8))
    B_pad = _round_up(B, TB)

    x = agent_embedding
    if B_pad != B:
        x = jnp.pad(x, ((0, B_pad - B), (0, 0)))
    x = x.astype(compute_dtype)

    w1c = w1.astype(compute_dtype)
    w2p = jnp.pad(w2, ((0, 0), (0, O_pad - O))).astype(compute_dtype)
    b1_2d = b1.reshape(1, D).astype(jnp.float32)
    b2_2d = jnp.pad(b2, (0, O_pad - O)).reshape(1, O_pad).astype(jnp.float32)

    grid = (B_pad // TB,)

    itemsize = jnp.dtype(compute_dtype).itemsize
    cost = pl.CostEstimate(
        flops=2 * B_pad * D * (D + O_pad),
        transcendentals=0,
        bytes_accessed=(B_pad * D * itemsize            # x
                        + D * D * itemsize              # w1
                        + D * O_pad * itemsize          # w2
                        + (D + O_pad) * 4               # biases
                        + B_pad * O_pad * jnp.dtype(out_dtype).itemsize),  # out
    )

    out = pl.pallas_call(
        _decoder_kernel,
        out_shape=jax.ShapeDtypeStruct((B_pad, O_pad), out_dtype),
        grid=grid,
        in_specs=[
            pl.BlockSpec((TB, D), lambda i: (i, 0)),       # x: tiled over batch
            pl.BlockSpec((D, D), lambda i: (0, 0)),        # w1: VMEM-resident
            pl.BlockSpec((1, D), lambda i: (0, 0)),        # b1
            pl.BlockSpec((D, O_pad), lambda i: (0, 0)),    # w2 (padded)
            pl.BlockSpec((1, O_pad), lambda i: (0, 0)),    # b2 (padded)
        ],
        out_specs=pl.BlockSpec((TB, O_pad), lambda i: (i, 0)),
        compiler_params=pltpu.CompilerParams(
            dimension_semantics=("parallel",)),            # megacore / v7x dual-TC
        cost_estimate=cost,
    )(x, w1c, b1_2d, w2p, b2_2d)

    return out[:B, :O]


def _init_linear(key, fan_in, fan_out):
    # Deterministic init mimicking torch.nn.Linear default (uniform +-1/sqrt(fan_in)).
    kw, kb = jax.random.split(key)
    bound = 1.0 / jnp.sqrt(fan_in)
    # Stored directly as (in, out), i.e. transposed relative to torch's (out, in).
    w = jax.random.uniform(kw, (fan_in, fan_out), jnp.float32, -bound, bound)
    b = jax.random.uniform(kb, (fan_out,), jnp.float32, -bound, bound)
    return w, b


if __name__ == "__main__":
    # args.agent_embedding_dim = 32, args.obs_dim = 16, args.N = 8
    agent_embedding_dim = 32
    obs_dim = 16
    N = 8
    decoder_out_dim = obs_dim + N
    batch = 8

    key = jax.random.PRNGKey(0)
    kx, k1, k2 = jax.random.split(key, 3)

    agent_embedding = jax.random.normal(kx, (batch, agent_embedding_dim), jnp.float32)
    w1, b1 = _init_linear(k1, agent_embedding_dim, agent_embedding_dim)
    w2, b2 = _init_linear(k2, agent_embedding_dim, decoder_out_dim)

    # Pure-JAX reference of the forward semantics.
    ref = jnp.maximum(agent_embedding @ w1 + b1, 0.0) @ w2 + b2

    # 1) Exact-semantics check: f32 compute path.
    out_f32 = agent_embedding_decoder(agent_embedding, w1, b1, w2, b2,
                                      compute_dtype=jnp.float32)
    out_f32 = jax.block_until_ready(out_f32)
    assert out_f32.shape == (batch, decoder_out_dim)
    assert jnp.allclose(out_f32, ref, atol=1e-5, rtol=1e-5)

    # 2) Production path: bf16 MXU operands, f32 accumulation (looser tolerance).
    out_bf16 = agent_embedding_decoder(agent_embedding, w1, b1, w2, b2,
                                       compute_dtype=jnp.bfloat16)
    out_bf16 = jax.block_until_ready(out_bf16)
    assert out_bf16.shape == (batch, decoder_out_dim)
    assert jnp.allclose(out_bf16, ref, atol=3e-2, rtol=3e-2)

    # 3) Multi-tile batched path: exercises grid > 1, row padding, resident weights.
    big_batch = 300
    big_x = jax.random.normal(kx, (big_batch, agent_embedding_dim), jnp.float32)
    big_ref = jnp.maximum(big_x @ w1 + b1, 0.0) @ w2 + b2
    big_out = agent_embedding_decoder(big_x, w1, b1, w2, b2,
                                      block_rows=128, compute_dtype=jnp.float32)
    big_out = jax.block_until_ready(big_out)
    assert big_out.shape == (big_batch, decoder_out_dim)
    assert jnp.allclose(big_out, big_ref, atol=1e-5, rtol=1e-5)

    print("KERNEL_OK")
</pallas_src>

<mosaic_0001>
module attributes {stable_mosaic.version = 11 : i64} {
  func.func @_decoder_kernel(%arg0: i32, %arg1: memref<8x32xf32, #tpu.memory_space<vmem>>, %arg2: memref<32x32xf32, #tpu.memory_space<vmem>>, %arg3: memref<1x32xf32, #tpu.memory_space<vmem>>, %arg4: memref<32x128xf32, #tpu.memory_space<vmem>>, %arg5: memref<1x128xf32, #tpu.memory_space<vmem>>, %arg6: memref<8x128xf32, #tpu.memory_space<vmem>>) attributes {dimension_semantics = [#tpu.dimension_semantics<parallel>], iteration_bounds = array<i64: 1>, scalar_prefetch = 0 : i64, scratch_operands = 0 : i64, tpu.core_type = #tpu.core_type<tc>, window_params = [{transform_indices = @transform_0, window_bounds = array<i64: 8, 32>}, {pipeline_mode = #tpu.pipeline_mode<synchronous>, transform_indices = @transform_1, window_bounds = array<i64: 32, 32>}, {pipeline_mode = #tpu.pipeline_mode<synchronous>, transform_indices = @transform_2, window_bounds = array<i64: 1, 32>}, {pipeline_mode = #tpu.pipeline_mode<synchronous>, transform_indices = @transform_3, window_bounds = array<i64: 32, 128>}, {pipeline_mode = #tpu.pipeline_mode<synchronous>, transform_indices = @transform_4, window_bounds = array<i64: 1, 128>}, {transform_indices = @transform_5, window_bounds = array<i64: 8, 128>}]} {
    %c0 = arith.constant 0 : index
    %c0_0 = arith.constant 0 : index
    %0 = vector.load %arg1[%c0, %c0_0] : memref<8x32xf32, #tpu.memory_space<vmem>>, vector<8x32xf32>
    %c0_1 = arith.constant 0 : index
    %c0_2 = arith.constant 0 : index
    %1 = vector.load %arg2[%c0_1, %c0_2] : memref<32x32xf32, #tpu.memory_space<vmem>>, vector<32x32xf32>
    %cst = arith.constant dense<0.000000e+00> : vector<8x32xf32>
    %2 = tpu.matmul %0, %1, %cst {dimension_numbers = #tpu.dot_dimension_numbers<[1], [0], [0], [1], [0, 0, 1, 1], [], []>} : vector<8x32xf32>, vector<32x32xf32>, vector<8x32xf32> -> vector<8x32xf32>
    %c0_3 = arith.constant 0 : index
    %c0_4 = arith.constant 0 : index
    %3 = vector.load %arg3[%c0_3, %c0_4] : memref<1x32xf32, #tpu.memory_space<vmem>>, vector<1x32xf32>
    %4 = vector.broadcast %3 : vector<1x32xf32> to vector<8x32xf32>
    %5 = arith.addf %2, %4 : vector<8x32xf32>
    %cst_5 = arith.constant 0.000000e+00 : f32
    %6 = vector.broadcast %cst_5 : f32 to vector<8x32xf32>
    %7 = arith.maximumf %5, %6 : vector<8x32xf32>
    %c0_6 = arith.constant 0 : index
    %c0_7 = arith.constant 0 : index
    %8 = vector.load %arg4[%c0_6, %c0_7] : memref<32x128xf32, #tpu.memory_space<vmem>>, vector<32x128xf32>
    %cst_8 = arith.constant dense<0.000000e+00> : vector<8x128xf32>
    %9 = tpu.matmul %7, %8, %cst_8 {dimension_numbers = #tpu.dot_dimension_numbers<[1], [0], [0], [1], [0, 0, 1, 1], [], []>} : vector<8x32xf32>, vector<32x128xf32>, vector<8x128xf32> -> vector<8x128xf32>
    %c0_9 = arith.constant 0 : index
    %c0_10 = arith.constant 0 : index
    %10 = vector.load %arg5[%c0_9, %c0_10] : memref<1x128xf32, #tpu.memory_space<vmem>>, vector<1x128xf32>
    %11 = vector.broadcast %10 : vector<1x128xf32> to vector<8x128xf32>
    %12 = arith.addf %9, %11 : vector<8x128xf32>
    %c0_11 = arith.constant 0 : index
    %c0_12 = arith.constant 0 : index
    %13 = vector.load %arg6[%c0_11, %c0_12] : memref<8x128xf32, #tpu.memory_space<vmem>>, vector<8x128xf32>
    tpu.vector_store %arg6[%c0_11, %c0_12], %12 {strides = array<i32>} : memref<8x128xf32, #tpu.memory_space<vmem>>, vector<8x128xf32>,
    return
  }
  func.func @transform_0(%arg0: i32) -> (i32, i32) {
    %c0_i32 = arith.constant 0 : i32
    %c0_i32_0 = arith.constant 0 : i32
    return %arg0, %c0_i32 : i32, i32
  }
  func.func @transform_1(%arg0: i32) -> (i32, i32) {
    %c0_i32 = arith.constant 0 : i32
    %c0_i32_0 = arith.constant 0 : i32
    %c0_i32_1 = arith.constant 0 : i32
    return %c0_i32, %c0_i32_0 : i32, i32
  }
  func.func @transform_2(%arg0: i32) -> (i32, i32) {
    %c0_i32 = arith.constant 0 : i32
    %c0_i32_0 = arith.constant 0 : i32
    %c0_i32_1 = arith.constant 0 : i32
    return %c0_i32, %c0_i32_0 : i32, i32
  }
  func.func @transform_3(%arg0: i32) -> (i32, i32) {
    %c0_i32 = arith.constant 0 : i32
    %c0_i32_0 = arith.constant 0 : i32
    %c0_i32_1 = arith.constant 0 : i32
    return %c0_i32, %c0_i32_0 : i32, i32
  }
  func.func @transform_4(%arg0: i32) -> (i32, i32) {
    %c0_i32 = arith.constant 0 : i32
    %c0_i32_0 = arith.constant 0 : i32
    %c0_i32_1 = arith.constant 0 : i32
    return %c0_i32, %c0_i32_0 : i32, i32
  }
  func.func @transform_5(%arg0: i32) -> (i32, i32) {
    %c0_i32 = arith.constant 0 : i32
    %c0_i32_0 = arith.constant 0 : i32
    return %arg0, %c0_i32 : i32, i32
  }
}

</mosaic_0001>

<bundles_post_ra>
// kernel: tpu_custom_call.1
= control target key start
LH: loop header
LB: loop body
LE: loop exit
PB: predicated region body
PF: predicated region fallthrough
CT: control target
= control target key end

     0   :  { %10 = vsyncpa [#allocation3], 0  ;;  %s316_s0 = inlined_call_operand.hbm [shape: f32[8,32], index: 0, kind: input, shape index: {}]   ;;  %s317_s1 = inlined_call_operand.hbm [shape: f32[32,32], index: 1, kind: input, shape index: {}]   ;;  %s318_s2 = inlined_call_operand.vmem [shape: f32[1,32], index: 2, kind: input, shape index: {}]   ;;  %s319_s3 = inlined_call_operand.hbm [shape: f32[32,128], index: 3, kind: input, shape index: {}]   ;;  %s320_s4 = inlined_call_operand.vmem [shape: f32[1,128], index: 4, kind: input, shape index: {}]   ;;  %s321_s5 = inlined_call_operand.hbm [shape: f32[8,128], index: 5, kind: output, shape index: {}]  }
   0x1   :  { %11 = vsyncpa [#allocation6], 0  ;;  %s28_s20 = sshll.u32 %s317_s1, 4  ;;  %s29_s20 = int_to_ptr.hbm [resolvable:$true] %s28_s20 }
   0x2   :  { %12 = vsyncpa [#allocation4], 0  ;;  %s262_s21 = smov [#allocation5]   ;;  %s18_s25 = sshll.u32 %s316_s0, 4  ;;  %s19_s25 = int_to_ptr.hbm [resolvable:$true] %s18_s25 }
   0x3   :  { %s30_s22 = sshll.u32 %s262_s21, 4  ;;  %s263_s26 = smov 128   ;;  %s31_s22 = int_to_ptr.vmem [resolvable:$true] %s30_s22 }
   0x4   :  { %s264_s27 = smov 8   ;;  %s265_s28 = smov [#allocation2]  }
   0x5   :  { %36 = dma.hbm_to_vmem [thread:$0]  %s29_s20, 512, %s31_s22, [#allocation6], %s263_s26, %s263_s26, %s264_s27  }
   0x6   :  { %s20_s29 = sshll.u32 %s265_s28, 4  ;;  %s43_s7 = sshll.u32 %s319_s3, 4  ;;  %s21_s29 = int_to_ptr.vmem [resolvable:$true] %s20_s29  ;;  %s44_s7 = int_to_ptr.hbm [resolvable:$true] %s43_s7 }
   0x7   :  { %23 = dma.hbm_to_vmem [thread:$0]  %s19_s25, 128, %s21_s29, [#allocation3]  }
   0x8   :  { %s266_s1 = smov [#allocation7]  }
   0x9   :  { %s45_s8 = sshll.u32 %s266_s1, 4  ;;  %s46_s8 = int_to_ptr.vmem [resolvable:$true] %s45_s8 }
   0xa   :  { %51 = dma.hbm_to_vmem [thread:$0]  %s44_s7, 512, %s46_s8, [#allocation6], %s263_s26, %s263_s26, %s264_s27  }
   0xb   :  { %256 = dma.done.wait [#allocation3], 128  }
   0xc   :  { %257 = vsyncadd [#allocation3], 4294967168 }
   0xd   :  { %258 = dma.done.wait [#allocation6], 1024  }
   0xe   :  { %259 = vsyncadd [#allocation6], 4294966272  ;;  %v70_v0 = vld [vmem:[#allocation5 + $0x18] sm:$0xff]  ;;  %v69_v1 = vld [vmem:[#allocation5 + $0x10] sm:$0xff]  ;;  %vm75_vm0 = vcmask 261120   ;;  %s267_s11 = smov [#allocation8]  }
   0xf   :  { %91 = vmatpush.msra.mxu0 %v70_v0  ;;  %v103_v2 = vld [vmem:[#allocation7 + $0x18] sm:$0xff]  ;;  %v68_v3 = vld [vmem:[#allocation5 + $0x8] sm:$0xff]  ;;  %v67_v4 = vld [vmem:[#allocation5] sm:$0xff]  ;;  %s137_s12 = sshll.u32 %s267_s11, 4  ;;  %s139_s15 = sshll.u32 %s321_s5, 4  ;;  %s138_s12 = int_to_ptr.vmem [resolvable:$true] %s137_s12  ;;  %s140_s15 = int_to_ptr.hbm [resolvable:$true] %s139_s15 }
  0x10   :  { %123 = vmatpush.msra.mxu1 %v103_v2  ;;  %v66_v5 = vld [vmem:[#allocation2] sm:$0xff]  ;;  %v102_v6 = vld [vmem:[#allocation7 + $0x10] sm:$0xff]  ;;  %v101_v7 = vld [vmem:[#allocation7 + $0x8] sm:$0xff] }
  0x11   :  { %92 = vmatpush.msra.mxu0 %v69_v1  ;;  %v100_v8 = vld [vmem:[#allocation7] sm:$0xff]  ;;  %v158_v9 = vld [vmem:[%s318_s2] ss:$0 sm:$0xff] }
  0x12   :  { %124 = vmatpush.msra.mxu1 %v102_v6  ;;  %v159_v13 = vld [vmem:[%s320_s4] ss:$0 sm:$0xff] }
  0x13   :  { %93 = vmatpush.msra.mxu0 %v68_v3 }
  0x14   :  { %125 = vmatpush.msra.mxu1 %v101_v7 }
  0x15   :  { %94 = vmatpush.msra.mxu0 %v67_v4 }
  0x16   :  { %150 = vmatmul.msk.f32.vlgmr.msra.gmra.mxu0 %vm75_vm0, %v66_v5  ;;  %126 = vmatpush.msra.mxu1 %v100_v8 }
  0x93   :  { %v96_v10 = vpop.f32.mrf.mxu0 }
  0x94   :  { %v97_v11 = vadd.f32 %v158_v9, %v96_v10 }
  0x96   :  { %v99_v12 = vmax.f32 %v97_v11, 0.0 }
  0x98   :  { %151 = vmatmul.msk.f32.vlgmr.msra.gmra.mxu1 %vm75_vm0, %v99_v12 }
 0x115   :  { %v128_v14 = vpop.f32.mrf.mxu1 }
 0x116   :  { %v129_v15 = vadd.f32 %v159_v13, %v128_v14 }
 0x118   :  { %131 = vst [vmem:[#allocation8] sm:$0xff] %v129_v15 }
 0x119   :  { %142 = dma.vmem_to_hbm [thread:$0]  %s138_s12, 128, %s140_s15, [#allocation4]  }
 0x11a   :  { %260 = dma.done.wait [#allocation4], 128  }
 0x11b   :  { %261 = vsyncadd [#allocation4], 4294967168 }
 0x11c   :  { %147 = vsyncpa [#allocation3], 1 }
 0x11d   :  { %148 = vsyncpa [#allocation6], 1 }
 0x11e   :  { %149 = vsyncpa [#allocation4], 1 }

</bundles_post_ra>
